<compile_context>
chip_gen: v7x
topology: tpu7x:2x2x1
jax: 0.10.0
libtpu: 0.0.40
codegen_flags: <defaults>
</compile_context>

<pallas_src>
import functools

import jax
import jax.numpy as jnp
from jax.experimental import pallas as pl
from jax.experimental.pallas import tpu as pltpu

HIDDEN = 128
LANE = 128


def _round_up(x, m):
    return ((x + m - 1) // m) * m


def qnet_kernel(action_dim, want_q, want_a,
                x_ref, w1_ref, b1_ref, w2_ref, b2_ref, w3_ref, b3_ref,
                *out_refs):
    """Fused 3-layer MLP (+ optional per-row argmax) for one batch tile.

    Matmuls run on the MXU with bf16 operands / f32 accumulation; bias-add and
    ReLU are f32 VPU ops on the accumulator.
    """
    x = x_ref[...].astype(jnp.bfloat16)                               # (TB, state_dim)
    h1 = jnp.dot(x, w1_ref[...], preferred_element_type=jnp.float32)
    h1 = jnp.maximum(h1 + b1_ref[...], 0.0)                           # f32 (TB, 128)
    h2 = jnp.dot(h1.astype(jnp.bfloat16), w2_ref[...],
                 preferred_element_type=jnp.float32)
    h2 = jnp.maximum(h2 + b2_ref[...], 0.0)                           # f32 (TB, 128)
    q = jnp.dot(h2.astype(jnp.bfloat16), w3_ref[...],
                preferred_element_type=jnp.float32) + b3_ref[...]     # (TB, OUT_PAD)

    refs = list(out_refs)
    if want_q:
        q_ref = refs.pop(0)
        # Store only the real action columns (narrow masked vst; the padded
        # 128-wide matmul result never leaves VMEM).
        q_ref[...] = q[:, :action_dim]
    if want_a:
        a_ref = refs.pop(0)
        # argmax = first index attaining the row max (matches torch.argmax
        # tie-breaking). Padded lanes are masked out; the final clamp keeps the
        # action in-range even for all-NaN rows.
        out_pad = q.shape[-1]
        col = jax.lax.broadcasted_iota(jnp.int32, q.shape, 1)
        masked = jnp.where(col < action_dim, q, jnp.finfo(jnp.float32).min)
        row_max = jnp.max(masked, axis=-1, keepdims=True)
        idx = jnp.where(masked == row_max, col.astype(jnp.float32),
                        jnp.float32(out_pad))
        a = jnp.min(idx, axis=-1, keepdims=True).astype(jnp.int32)
        a_ref[...] = jnp.minimum(a, action_dim - 1)


def _vmem_limit_bytes(tb_eff, state_dim, hidden, out_pad, action_dim,
                      want_q, want_a):
    """Rough VMEM budget for this tiling (double-buffered I/O + f32 temporaries)."""
    weights = 2 * (state_dim * hidden + hidden * hidden + hidden * out_pad) \
        + 4 * (2 * hidden + out_pad)
    x_io = 2 * tb_eff * state_dim * 4
    out_io = 0
    if want_q:
        out_io += 2 * tb_eff * action_dim * 4
    if want_a:
        out_io += 2 * tb_eff * 4
    temps = tb_eff * (2 * hidden + out_pad) * 4 + 2 * tb_eff * 2 * hidden
    est = weights + x_io + out_io + temps
    return int(min(max(2 * est, 16 << 20), 48 << 20))


@functools.partial(jax.jit,
                   static_argnames=("action_dim", "want_q", "want_a", "tb"))
def _qnet_pallas(x, w1, b1, w2, b2, w3, b3, *, action_dim,
                 want_q=True, want_a=False, tb=1024):
    assert want_q or want_a
    batch, state_dim = x.shape
    hidden = w1.shape[1]
    out_pad = w3.shape[1]

    if batch == 0:  # degenerate empty batch
        outs = []
        if want_q:
            outs.append(jnp.zeros((0, action_dim), jnp.float32))
        if want_a:
            outs.append(jnp.zeros((0,), jnp.int32))
        return tuple(outs)

    # Tile sizing: big tiles (compute per tile is tiny, so amortize per-step
    # overhead), balanced row counts so batch padding is <= 7 rows per tile,
    # and an even tile count when >1 so v7x megacore splits evenly.
    tb_cap = max(8, min(tb, 4096))
    num_tiles = -(-batch // tb_cap)
    if num_tiles > 1 and num_tiles % 2:
        num_tiles += 1
    tb_eff = _round_up(-(-batch // num_tiles), 8)
    batch_pad = tb_eff * num_tiles

    # Row-only zero pad (no lane padding, no dtype copy).
    x_p = x if batch_pad == batch else jnp.pad(x, ((0, batch_pad - batch), (0, 0)))

    out_shapes, out_specs, names = [], [], []
    if want_q:
        out_shapes.append(jax.ShapeDtypeStruct((batch_pad, action_dim), jnp.float32))
        out_specs.append(pl.BlockSpec((tb_eff, action_dim), lambda i: (i, 0)))
        names.append("q")
    if want_a:
        out_shapes.append(jax.ShapeDtypeStruct((batch_pad, 1), jnp.int32))
        out_specs.append(pl.BlockSpec((tb_eff, 1), lambda i: (i, 0)))
        names.append("a")

    flops = 2 * batch_pad * (state_dim * hidden + hidden * hidden + hidden * out_pad)
    bytes_accessed = (
        batch_pad * state_dim * 4
        + 2 * (state_dim * hidden + hidden * hidden + hidden * out_pad)
        + 4 * (2 * hidden + out_pad)
        + (batch_pad * action_dim * 4 if want_q else 0)
        + (batch_pad * 4 if want_a else 0))

    kernel = functools.partial(qnet_kernel, action_dim, want_q, want_a)
    results = pl.pallas_call(
        kernel,
        out_shape=tuple(out_shapes),
        grid=(num_tiles,),
        in_specs=[
            pl.BlockSpec((tb_eff, state_dim), lambda i: (i, 0)),    # x: streamed
            pl.BlockSpec((state_dim, hidden), lambda i: (0, 0)),    # w1: resident
            pl.BlockSpec((1, hidden), lambda i: (0, 0)),            # b1
            pl.BlockSpec((hidden, hidden), lambda i: (0, 0)),       # w2
            pl.BlockSpec((1, hidden), lambda i: (0, 0)),            # b2
            pl.BlockSpec((hidden, out_pad), lambda i: (0, 0)),      # w3 (lane-padded)
            pl.BlockSpec((1, out_pad), lambda i: (0, 0)),           # b3
        ],
        out_specs=tuple(out_specs),
        compiler_params=pltpu.CompilerParams(
            dimension_semantics=("parallel",),   # megacore split on v7x
            vmem_limit_bytes=_vmem_limit_bytes(
                tb_eff, state_dim, hidden, out_pad, action_dim, want_q, want_a),
        ),
        cost_estimate=pl.CostEstimate(
            flops=flops, transcendentals=0, bytes_accessed=bytes_accessed),
    )(x_p, w1, b1, w2, b2, w3, b3)

    outs = []
    for name, r in zip(names, results):
        if name == "q":
            outs.append(r[:batch])
        else:
            outs.append(r[:batch, 0])
    return tuple(outs)


def qnetwork_forward(x, padded_params, action_dim, tb=1024):
    """Equivalent of QNetwork.forward: returns (batch, action_dim) q-values."""
    (q,) = _qnet_pallas(x, *padded_params, action_dim=action_dim,
                        want_q=True, want_a=False, tb=tb)
    return q


def qnetwork_get_action(x, padded_params, action_dim, tb=1024):
    """Equivalent of QNetwork.get_action, vectorized as per-row argmax
    (identical to torch.argmax(logits) for a single state). The q-values are
    never written to HBM on this path."""
    (a,) = _qnet_pallas(x, *padded_params, action_dim=action_dim,
                        want_q=False, want_a=True, tb=tb)
    return a


def orthogonal_init(key, rows, cols, gain):
    """Deterministic orthogonal init (mirrors torch.nn.init.orthogonal_ semantics)."""
    n = max(rows, cols)
    m = min(rows, cols)
    a = jax.random.normal(key, (n, m), dtype=jnp.float32)
    q, r = jnp.linalg.qr(a)
    q = q * jnp.sign(jnp.diag(r))  # make the decomposition unique
    if rows < cols:
        q = q.T
    return (gain * q[:rows, :cols]).astype(jnp.float32)


def make_params(key, state_dim, action_dim, hidden=HIDDEN):
    """PyTorch-equivalent f32 params, stored transposed to (in, out) for x @ W."""
    k1, k2, k3 = jax.random.split(key, 3)
    sqrt2 = float(jnp.sqrt(2.0))
    w1 = orthogonal_init(k1, hidden, state_dim, sqrt2).T       # (state_dim, 128)
    w2 = orthogonal_init(k2, hidden, hidden, sqrt2).T          # (128, 128)
    w3 = orthogonal_init(k3, action_dim, hidden, 1.0).T        # (128, action_dim)
    b1 = jnp.zeros((1, hidden), jnp.float32)
    b2 = jnp.zeros((1, hidden), jnp.float32)
    b3 = jnp.zeros((1, action_dim), jnp.float32)
    return w1, b1, w2, b2, w3, b3


def prepare_params(w1, b1, w2, b2, w3, b3):
    """One-time host-side prep: cast matmul operands to bf16 and zero-pad only
    the OUTPUT lanes of layer 3 to 128 (keeps the last MXU matmul unmasked).
    w1 stays (state_dim, 128) — x is streamed unpadded. Biases stay f32."""
    hidden = w1.shape[1]
    action_dim = int(w3.shape[1])
    out_pad = _round_up(action_dim, LANE)

    w3p = jnp.zeros((hidden, out_pad), jnp.float32).at[:, :action_dim].set(w3)
    b3p = jnp.zeros((1, out_pad), jnp.float32).at[:, :action_dim].set(b3)

    padded = (
        w1.astype(jnp.bfloat16),
        b1.astype(jnp.float32),
        w2.astype(jnp.bfloat16),
        b2.astype(jnp.float32),
        w3p.astype(jnp.bfloat16),
        b3p,
    )
    return padded, action_dim


if __name__ == "__main__":
    state_dim = 16
    action_dim = 8
    batch = 32

    key = jax.random.PRNGKey(0)
    kx, kp, kx2 = jax.random.split(key, 3)
    x = jax.random.normal(kx, (batch, state_dim), dtype=jnp.float32)
    raw_params = make_params(kp, state_dim, action_dim)
    padded_params, act_dim = prepare_params(*raw_params)

    # Single-tile paths (small per-step RL batch).
    q = qnetwork_forward(x, padded_params, act_dim)
    a = qnetwork_get_action(x, padded_params, act_dim)
    q, a = jax.block_until_ready((q, a))

    # Plain-JAX f32 reference (same math as the PyTorch forward).
    w1, b1, w2, b2, w3, b3 = raw_params

    def ref_fwd(xx):
        h1 = jnp.maximum(xx @ w1 + b1, 0.0)
        h2 = jnp.maximum(h1 @ w2 + b2, 0.0)
        return h2 @ w3 + b3

    ref = ref_fwd(x)
    assert q.shape == (batch, action_dim)
    assert a.shape == (batch,)
    # Loose tolerance: kernel uses bf16 MXU operands (== TPU default matmul precision).
    assert jnp.allclose(q, ref, atol=5e-2, rtol=5e-2)
    assert bool(jnp.all((a >= 0) & (a < act_dim)))

    # Joint call: fused argmax must be exactly consistent with the kernel's own q.
    qb, ab = _qnet_pallas(x, *padded_params, action_dim=act_dim,
                          want_q=True, want_a=True)
    qb, ab = jax.block_until_ready((qb, ab))
    assert jnp.array_equal(ab, jnp.argmax(qb, axis=-1).astype(jnp.int32))
    assert jnp.array_equal(a, ab)

    # Multi-tile path: non-multiple batch, grid > 1, exercises pipelining,
    # balanced tiles (300 rows -> 4 tiles of 80) and row padding.
    x2 = jax.random.normal(kx2, (300, state_dim), dtype=jnp.float32)
    q2 = jax.block_until_ready(qnetwork_forward(x2, padded_params, act_dim, tb=128))
    ref2 = ref_fwd(x2)
    assert q2.shape == (300, action_dim)
    assert jnp.allclose(q2, ref2, atol=5e-2, rtol=5e-2)

    print("KERNEL_OK")
</pallas_src>

<mosaic_0001>
module attributes {stable_mosaic.version = 11 : i64} {
  func.func @qnet_kernel(%arg0: i32, %arg1: memref<32x16xf32, #tpu.memory_space<vmem>>, %arg2: memref<16x128xbf16, #tpu.memory_space<vmem>>, %arg3: memref<1x128xf32, #tpu.memory_space<vmem>>, %arg4: memref<128x128xbf16, #tpu.memory_space<vmem>>, %arg5: memref<1x128xf32, #tpu.memory_space<vmem>>, %arg6: memref<128x128xbf16, #tpu.memory_space<vmem>>, %arg7: memref<1x128xf32, #tpu.memory_space<vmem>>, %arg8: memref<32x8xf32, #tpu.memory_space<vmem>>) attributes {dimension_semantics = [#tpu.dimension_semantics<parallel>], iteration_bounds = array<i64: 1>, scalar_prefetch = 0 : i64, scratch_operands = 0 : i64, tpu.core_type = #tpu.core_type<tc>, window_params = [{transform_indices = @transform_0, window_bounds = array<i64: 32, 16>}, {pipeline_mode = #tpu.pipeline_mode<synchronous>, transform_indices = @transform_1, window_bounds = array<i64: 16, 128>}, {pipeline_mode = #tpu.pipeline_mode<synchronous>, transform_indices = @transform_2, window_bounds = array<i64: 1, 128>}, {pipeline_mode = #tpu.pipeline_mode<synchronous>, transform_indices = @transform_3, window_bounds = array<i64: 128, 128>}, {pipeline_mode = #tpu.pipeline_mode<synchronous>, transform_indices = @transform_4, window_bounds = array<i64: 1, 128>}, {pipeline_mode = #tpu.pipeline_mode<synchronous>, transform_indices = @transform_5, window_bounds = array<i64: 128, 128>}, {pipeline_mode = #tpu.pipeline_mode<synchronous>, transform_indices = @transform_6, window_bounds = array<i64: 1, 128>}, {transform_indices = @transform_7, window_bounds = array<i64: 32, 8>}]} {
    %c0 = arith.constant 0 : index
    %c0_0 = arith.constant 0 : index
    %0 = vector.load %arg1[%c0, %c0_0] : memref<32x16xf32, #tpu.memory_space<vmem>>, vector<32x16xf32>
    %1 = arith.truncf %0 : vector<32x16xf32> to vector<32x16xbf16>
    %c0_1 = arith.constant 0 : index
    %c0_2 = arith.constant 0 : index
    %2 = vector.load %arg2[%c0_1, %c0_2] : memref<16x128xbf16, #tpu.memory_space<vmem>>, vector<16x128xbf16>
    %cst = arith.constant dense<0.000000e+00> : vector<32x128xf32>
    %3 = tpu.matmul %1, %2, %cst {dimension_numbers = #tpu.dot_dimension_numbers<[1], [0], [0], [1], [0, 0, 1, 1], [], []>} : vector<32x16xbf16>, vector<16x128xbf16>, vector<32x128xf32> -> vector<32x128xf32>
    %c0_3 = arith.constant 0 : index
    %c0_4 = arith.constant 0 : index
    %4 = vector.load %arg3[%c0_3, %c0_4] : memref<1x128xf32, #tpu.memory_space<vmem>>, vector<1x128xf32>
    %5 = vector.broadcast %4 : vector<1x128xf32> to vector<32x128xf32>
    %6 = arith.addf %3, %5 : vector<32x128xf32>
    %cst_5 = arith.constant 0.000000e+00 : f32
    %7 = vector.broadcast %cst_5 : f32 to vector<32x128xf32>
    %8 = arith.maximumf %6, %7 : vector<32x128xf32>
    %9 = arith.truncf %8 : vector<32x128xf32> to vector<32x128xbf16>
    %c0_6 = arith.constant 0 : index
    %c0_7 = arith.constant 0 : index
    %10 = vector.load %arg4[%c0_6, %c0_7] : memref<128x128xbf16, #tpu.memory_space<vmem>>, vector<128x128xbf16>
    %cst_8 = arith.constant dense<0.000000e+00> : vector<32x128xf32>
    %11 = tpu.matmul %9, %10, %cst_8 {dimension_numbers = #tpu.dot_dimension_numbers<[1], [0], [0], [1], [0, 0, 1, 1], [], []>} : vector<32x128xbf16>, vector<128x128xbf16>, vector<32x128xf32> -> vector<32x128xf32>
    %c0_9 = arith.constant 0 : index
    %c0_10 = arith.constant 0 : index
    %12 = vector.load %arg5[%c0_9, %c0_10] : memref<1x128xf32, #tpu.memory_space<vmem>>, vector<1x128xf32>
    %13 = vector.broadcast %12 : vector<1x128xf32> to vector<32x128xf32>
    %14 = arith.addf %11, %13 : vector<32x128xf32>
    %cst_11 = arith.constant 0.000000e+00 : f32
    %15 = vector.broadcast %cst_11 : f32 to vector<32x128xf32>
    %16 = arith.maximumf %14, %15 : vector<32x128xf32>
    %17 = arith.truncf %16 : vector<32x128xf32> to vector<32x128xbf16>
    %c0_12 = arith.constant 0 : index
    %c0_13 = arith.constant 0 : index
    %18 = vector.load %arg6[%c0_12, %c0_13] : memref<128x128xbf16, #tpu.memory_space<vmem>>, vector<128x128xbf16>
    %cst_14 = arith.constant dense<0.000000e+00> : vector<32x128xf32>
    %19 = tpu.matmul %17, %18, %cst_14 {dimension_numbers = #tpu.dot_dimension_numbers<[1], [0], [0], [1], [0, 0, 1, 1], [], []>} : vector<32x128xbf16>, vector<128x128xbf16>, vector<32x128xf32> -> vector<32x128xf32>
    %c0_15 = arith.constant 0 : index
    %c0_16 = arith.constant 0 : index
    %20 = vector.load %arg7[%c0_15, %c0_16] : memref<1x128xf32, #tpu.memory_space<vmem>>, vector<1x128xf32>
    %21 = vector.broadcast %20 : vector<1x128xf32> to vector<32x128xf32>
    %22 = arith.addf %19, %21 : vector<32x128xf32>
    %23 = vector.extract_strided_slice %22 {offsets = [0, 0], sizes = [32, 8], strides = [1, 1]} : vector<32x128xf32> to vector<32x8xf32>
    %c0_17 = arith.constant 0 : index
    %c0_18 = arith.constant 0 : index
    %24 = vector.load %arg8[%c0_17, %c0_18] : memref<32x8xf32, #tpu.memory_space<vmem>>, vector<32x8xf32>
    tpu.vector_store %arg8[%c0_17, %c0_18], %23 {strides = array<i32>} : memref<32x8xf32, #tpu.memory_space<vmem>>, vector<32x8xf32>,
    return
  }
  func.func @transform_0(%arg0: i32) -> (i32, i32) {
    %c0_i32 = arith.constant 0 : i32
    %c0_i32_0 = arith.constant 0 : i32
    return %arg0, %c0_i32 : i32, i32
  }
  func.func @transform_1(%arg0: i32) -> (i32, i32) {
    %c0_i32 = arith.constant 0 : i32
    %c0_i32_0 = arith.constant 0 : i32
    %c0_i32_1 = arith.constant 0 : i32
    return %c0_i32, %c0_i32_0 : i32, i32
  }
  func.func @transform_2(%arg0: i32) -> (i32, i32) {
    %c0_i32 = arith.constant 0 : i32
    %c0_i32_0 = arith.constant 0 : i32
    %c0_i32_1 = arith.constant 0 : i32
    return %c0_i32, %c0_i32_0 : i32, i32
  }
  func.func @transform_3(%arg0: i32) -> (i32, i32) {
    %c0_i32 = arith.constant 0 : i32
    %c0_i32_0 = arith.constant 0 : i32
    %c0_i32_1 = arith.constant 0 : i32
    return %c0_i32, %c0_i32_0 : i32, i32
  }
  func.func @transform_4(%arg0: i32) -> (i32, i32) {
    %c0_i32 = arith.constant 0 : i32
    %c0_i32_0 = arith.constant 0 : i32
    %c0_i32_1 = arith.constant 0 : i32
    return %c0_i32, %c0_i32_0 : i32, i32
  }
  func.func @transform_5(%arg0: i32) -> (i32, i32) {
    %c0_i32 = arith.constant 0 : i32
    %c0_i32_0 = arith.constant 0 : i32
    %c0_i32_1 = arith.constant 0 : i32
    return %c0_i32, %c0_i32_0 : i32, i32
  }
  func.func @transform_6(%arg0: i32) -> (i32, i32) {
    %c0_i32 = arith.constant 0 : i32
    %c0_i32_0 = arith.constant 0 : i32
    %c0_i32_1 = arith.constant 0 : i32
    return %c0_i32, %c0_i32_0 : i32, i32
  }
  func.func @transform_7(%arg0: i32) -> (i32, i32) {
    %c0_i32 = arith.constant 0 : i32
    %c0_i32_0 = arith.constant 0 : i32
    return %arg0, %c0_i32 : i32, i32
  }
}

</mosaic_0001>

<bundles_post_ra>
// kernel: _qnet_pallas.1
= control target key start
LH: loop header
LB: loop body
LE: loop exit
PB: predicated region body
PF: predicated region fallthrough
CT: control target
= control target key end

     0   :  { %12 = vsyncpa [#allocation3], 0  ;;  %s680_s0 = inlined_call_operand.vmem [shape: f32[32,16], index: 0, kind: input, shape index: {}]   ;;  %s681_s1 = inlined_call_operand.hbm [shape: bf16[16,128], index: 1, kind: input, shape index: {}]   ;;  %s682_s2 = inlined_call_operand.vmem [shape: f32[1,128], index: 2, kind: input, shape index: {}]   ;;  %s683_s3 = inlined_call_operand.hbm [shape: bf16[128,128], index: 3, kind: input, shape index: {}]   ;;  %s684_s4 = inlined_call_operand.vmem [shape: f32[1,128], index: 4, kind: input, shape index: {}]   ;;  %s685_s5 = inlined_call_operand.vmem [shape: bf16[128,128], index: 5, kind: input, shape index: {}]   ;;  %s686_s6 = inlined_call_operand.vmem [shape: f32[1,128], index: 6, kind: input, shape index: {}]   ;;  %s687_s7 = inlined_call_operand.vmem [shape: f32[32,8], index: 7, kind: output, shape index: {}]  }
   0x1   :  { %13 = vsyncpa [#allocation5], 0  ;;  %s555_s24 = smov [#allocation2]   ;;  %s507_s28 = scalar_lea.hbm %s681_s1, 128 }
   0x2   :  { %s21_s25 = sshll.u32 %s555_s24, 4  ;;  %p508_p0 = scmp.ne.s32.totalorder %s681_s1, %s507_s28  ;;  %s22_s25 = int_to_ptr.vmem [resolvable:$true] %s21_s25 }
   0x3   :  { %p511_p1 = scmp.lt.u32.totalorder %s507_s28, %s681_s1 }
   0x5   :  { %p513_p2 = pnand %p511_p1, %p508_p0 }
   0x7   :  { %516 = shalt.err (!%p513_p2)
}
   0x8   :  { %s517_s10 = scalar_lea.vmem %s22_s25, 128  ;;  %p522_p4 = scmp.lt.s32.totalorder %s22_s25, %s22_s25 }
   0x9   :  { %p518_p3 = scmp.ne.s32.totalorder %s22_s25, %s517_s10  ;;  %p523_p5 = scmp.lt.s32.totalorder %s517_s10, %s517_s10 }
   0xb   :  { %p524_p6 = por %p523_p5, %p522_p4 }
   0xd   :  { %p525_p7 = pnand %p524_p6, %p518_p3 }
   0xf   :  { %528 = shalt.err (!%p525_p7)
}
  0x10   :  { %s556_s11 = smov 64   ;;  %s557_s12 = smov 4  }
  0x11   :  { %27 = dma.hbm_to_vmem [thread:$0]  %s681_s1, 128, %s22_s25, [#allocation3], %s556_s11, %s556_s11, %s557_s12  }
  0x12   :  { %s558_s15 = smov [#allocation4]   ;;  %s529_s19 = scalar_lea.hbm %s683_s3, 1024 }
  0x13   :  { %s35_s16 = sshll.u32 %s558_s15, 4  ;;  %p530_p8 = scmp.ne.s32.totalorder %s683_s3, %s529_s19  ;;  %s36_s16 = int_to_ptr.vmem [resolvable:$true] %s35_s16 }
  0x14   :  { %p533_p9 = scmp.lt.u32.totalorder %s529_s19, %s683_s3 }
  0x16   :  { %p535_p10 = pnand %p533_p9, %p530_p8 }
  0x18   :  { %538 = shalt.err (!%p535_p10)
}
  0x19   :  { %s539_s24 = scalar_lea.vmem %s36_s16, 1024  ;;  %p544_p12 = scmp.lt.s32.totalorder %s36_s16, %s36_s16 }
  0x1a   :  { %p540_p11 = scmp.ne.s32.totalorder %s36_s16, %s539_s24  ;;  %p545_p13 = scmp.lt.s32.totalorder %s539_s24, %s539_s24 }
  0x1c   :  { %p546_p0 = por %p545_p13, %p544_p12 }
  0x1e   :  { %p547_p1 = pnand %p546_p0, %p540_p11 }
  0x20   :  { %550 = shalt.err (!%p547_p1)
}
  0x21   :  { %41 = dma.hbm_to_vmem [thread:$0]  %s683_s3, 1024, %s36_s16, [#allocation5], %s556_s11, %s556_s11, %s557_s12  }
  0x22   :  { %551 = dma.done.wait [#allocation3], 128  }
  0x23   :  { %552 = vsyncadd [#allocation3], 4294967168 }
  0x24   :  { %553 = dma.done.wait [#allocation5], 1024  }
  0x25   :  { %554 = vsyncadd [#allocation5], 4294966272  ;;  %v490_v0 = vld [vmem:[#allocation2] sm:$0xff]   ;;  %v56_v2 = vld [vmem:[%s680_s0 + $0x8] sm:$0xff]  ;;  %vm76_vm0 = vcmask 130048   ;;  %vm384_vm1 = vcmask 64512  }
  0x26   :  { %v55_v1 = vld [vmem:[%s680_s0] sm:$0xff]  ;;  %v57_v3 = vld [vmem:[%s680_s0 + $0x10] sm:$0xff]  ;;  %440 = vmatprep.subr.bf16.mxu0 %v490_v0  ;;  %v58_v5 = vld [vmem:[%s680_s0 + $0x18] sm:$0xff] }
  0x27   :  { %v59_v4 = vpack.c.bf16 %v56_v2, %v55_v1  ;;  %441 = vmatpush3.bf16.msra.mxu0 %v490_v0  ;;  %v60_v6 = vpack.c.bf16 %v58_v5, %v57_v3  ;;  %v491_v7 = vld [vmem:[#allocation4] sm:$0xff]   ;;  %v492_v8 = vld [vmem:[#allocation4 + $0x8] sm:$0xff]   ;;  %v493_v9 = vld [vmem:[#allocation4 + $0x10] sm:$0xff]  }
  0x28   :  { %446 = vmatprep.subr.bf16.mxu1 %v491_v7  ;;  %v494_v10 = vld [vmem:[#allocation4 + $0x18] sm:$0xff]   ;;  %v495_v11 = vld [vmem:[#allocation4 + $0x20] sm:$0xff]   ;;  %v496_v12 = vld [vmem:[#allocation4 + $0x28] sm:$0xff]  }
  0x29   :  { %442 = vmatprep.mubr.msk.bf16.mxu0 %vm76_vm0, %v59_v4  ;;  %447 = vmatpush3.bf16.msra.mxu1 %v491_v7  ;;  %v497_v13 = vld [vmem:[#allocation4 + $0x30] sm:$0xff]   ;;  %v498_v14 = vld [vmem:[#allocation4 + $0x38] sm:$0xff]   ;;  %v500_v16 = vld [vmem:[%s685_s5 + $0x8] sm:$0xff]  }
  0x2a   :  { %443 = vmatmul.mubr.msk.bf16.vlgmr.msra.gmra.mrb[0].mxu0 %vm76_vm0, %v60_v6  ;;  %448 = vmatprep.subr.bf16.mxu1 %v492_v8  ;;  %v499_v15 = vld [vmem:[%s685_s5] sm:$0xff]   ;;  %v501_v17 = vld [vmem:[%s685_s5 + $0x10] sm:$0xff]   ;;  %v502_v18 = vld [vmem:[%s685_s5 + $0x18] sm:$0xff]  }
  0x2b   :  { %466 = vmatprep.subr.bf16.mxu0 %v499_v15  ;;  %v503_v19 = vld [vmem:[%s685_s5 + $0x20] sm:$0xff]   ;;  %v504_v20 = vld [vmem:[%s685_s5 + $0x28] sm:$0xff]   ;;  %v505_v36 = vld [vmem:[%s685_s5 + $0x30] sm:$0xff]  }
  0x2c   :  { %467 = vmatpush3.bf16.msra.mxu0 %v499_v15  ;;  %v395_v21 = vld [vmem:[%s682_s2] ss:$0 sm:$0xff]  ;;  %v506_v37 = vld [vmem:[%s685_s5 + $0x38] sm:$0xff]  }
  0x2d   :  { %449 = vmatpush3.bf16.msra.mxu1 %v492_v8  ;;  %468 = vmatprep.subr.bf16.mxu0 %v500_v16  ;;  %v399_v38 = vld [vmem:[%s684_s4] ss:$0 sm:$0xff] }
  0x2e   :  { %450 = vmatprep.subr.bf16.mxu1 %v493_v9  ;;  %v408_v53 = vld [vmem:[%s686_s6] ss:$0 sm:$0xff] }
  0x30   :  { %469 = vmatpush3.bf16.msra.mxu0 %v500_v16 }
  0x31   :  { %451 = vmatpush3.bf16.msra.mxu1 %v493_v9  ;;  %470 = vmatprep.subr.bf16.mxu0 %v501_v17 }
  0x32   :  { %452 = vmatprep.subr.bf16.mxu1 %v494_v10 }
  0x34   :  { %471 = vmatpush3.bf16.msra.mxu0 %v501_v17 }
  0x35   :  { %453 = vmatpush3.bf16.msra.mxu1 %v494_v10  ;;  %472 = vmatprep.subr.bf16.mxu0 %v502_v18 }
  0x36   :  { %454 = vmatprep.subr.bf16.mxu1 %v495_v11 }
  0x38   :  { %473 = vmatpush3.bf16.msra.mxu0 %v502_v18 }
  0x39   :  { %455 = vmatpush3.bf16.msra.mxu1 %v495_v11  ;;  %474 = vmatprep.subr.bf16.mxu0 %v503_v19 }
  0x3a   :  { %456 = vmatprep.subr.bf16.mxu1 %v496_v12 }
  0x3c   :  { %475 = vmatpush3.bf16.msra.mxu0 %v503_v19 }
  0x3d   :  { %457 = vmatpush3.bf16.msra.mxu1 %v496_v12  ;;  %476 = vmatprep.subr.bf16.mxu0 %v504_v20 }
  0x3e   :  { %458 = vmatprep.subr.bf16.mxu1 %v497_v13 }
  0x40   :  { %477 = vmatpush3.bf16.msra.mxu0 %v504_v20 }
  0x41   :  { %459 = vmatpush3.bf16.msra.mxu1 %v497_v13  ;;  %478 = vmatprep.subr.bf16.mxu0 %v505_v36 }
  0x42   :  { %460 = vmatprep.subr.bf16.mxu1 %v498_v14 }
  0x44   :  { %479 = vmatpush3.bf16.msra.mxu0 %v505_v36 }
  0x45   :  { %461 = vmatpush3.bf16.msra.mxu1 %v498_v14  ;;  %480 = vmatprep.subr.bf16.mxu0 %v506_v37 }
  0x48   :  { %481 = vmatpush3.bf16.msra.mxu0 %v506_v37 }
  0xfd   :  { %v444_v22 = vpop.f32.mrb[0].mxu0 }
  0xfe   :  { %v126_v23 = vadd.f32 %v444_v22, %v395_v21  ;;  %v117_v24 = vpop.f32.mrb[1].mxu0 }
  0xff   :  { %v118_v25 = vadd.f32 %v395_v21, %v117_v24  ;;  %v445_v26 = vpop.f32.mrb[2].mxu0 }
 0x100   :  { %v129_v27 = vadd.f32 %v445_v26, %v395_v21  ;;  %v120_v28 = vpop.f32.mrb[3].mxu0  ;;  %v134_v30 = vmax.f32 %v126_v23, 0.0 }
 0x101   :  { %v121_v29 = vadd.f32 %v395_v21, %v120_v28  ;;  %v132_v32 = vmax.f32 %v118_v25, 0.0 }
 0x102   :  { %v135_v31 = vmax.f32 %v129_v27, 0.0 }
 0x103   :  { %v133_v33 = vmax.f32 %v121_v29, 0.0 }
 0x104   :  { %v137_v34 = vpack.c.bf16 %v135_v31, %v134_v30 }
 0x105   :  { %v136_v35 = vpack.c.bf16 %v133_v33, %v132_v32 }
 0x107   :  { %462 = vmatprep.mubr.bf16.mxu1 %v136_v35 }
 0x108   :  { %463 = vmatmul.mubr.bf16.vlgmr.msra.gmra.mrb[0].mxu1 %v137_v34 }
 0x1db   :  { %v464_v39 = vpop.f32.mrb[0].mxu1 }
 0x1dc   :  { %v252_v40 = vadd.f32 %v464_v39, %v399_v38  ;;  %v243_v41 = vpop.f32.mrb[1].mxu1 }
 0x1dd   :  { %v244_v42 = vadd.f32 %v399_v38, %v243_v41  ;;  %v465_v43 = vpop.f32.mrb[2].mxu1 }
 0x1de   :  { %v255_v44 = vadd.f32 %v465_v43, %v399_v38  ;;  %v246_v45 = vpop.f32.mrb[3].mxu1  ;;  %v260_v47 = vmax.f32 %v252_v40, 0.0 }
 0x1df   :  { %v247_v46 = vadd.f32 %v399_v38, %v246_v45  ;;  %v258_v49 = vmax.f32 %v244_v42, 0.0 }
 0x1e0   :  { %v261_v48 = vmax.f32 %v255_v44, 0.0 }
 0x1e1   :  { %v259_v50 = vmax.f32 %v247_v46, 0.0 }
 0x1e2   :  { %v263_v51 = vpack.c.bf16 %v261_v48, %v260_v47 }
 0x1e3   :  { %v262_v52 = vpack.c.bf16 %v259_v50, %v258_v49 }
 0x1e5   :  { %482 = vmatprep.mubr.bf16.mxu0 %v262_v52 }
 0x1e6   :  { %483 = vmatmul.mubr.bf16.vlgmr.msra.gmra.mrb[4].mxu0 %v263_v51 }
 0x2b9   :  { %v484_v54 = vpop.f32.mrb[4].mxu0 }
 0x2ba   :  { %v378_v55 = vadd.f32 %v484_v54, %v408_v53  ;;  %v369_v56 = vpop.f32.mrb[5].mxu0 }
 0x2bb   :  { %v370_v57 = vadd.f32 %v408_v53, %v369_v56  ;;  %v485_v58 = vpop.f32.mrb[6].mxu0 }
 0x2bc   :  { %387 = vst.msk [vmem:[%s687_s7 + $0x10] sm:$0xff] %vm384_vm1, %v378_v55  ;;  %v381_v59 = vadd.f32 %v485_v58, %v408_v53  ;;  %v372_v60 = vpop.f32.mrb[7].mxu0 }
 0x2bd   :  { %385 = vst.msk [vmem:[%s687_s7] sm:$0xff] %vm384_vm1, %v370_v57  ;;  %v373_v61 = vadd.f32 %v408_v53, %v372_v60 }
 0x2be   :  { %388 = vst.msk [vmem:[%s687_s7 + $0x18] sm:$0xff] %vm384_vm1, %v381_v59 }
 0x2bf   :  { %386 = vst.msk [vmem:[%s687_s7 + $0x8] sm:$0xff] %vm384_vm1, %v373_v61 }
 0x2c0   :  { %393 = vsyncpa [#allocation3], 1 }
 0x2c1   :  { %394 = vsyncpa [#allocation5], 1 }

</bundles_post_ra>
